<compile_context>
chip_gen: v7x
topology: tpu7x:2x2x1
jax: 0.10.0
libtpu: 0.0.40
codegen_flags: <defaults>
</compile_context>

<pallas_src>
import jax
import jax.numpy as jnp
from jax.experimental import pallas as pl
from jax.experimental.pallas import tpu as pltpu


_MAX_TILE_C = 2048                       # lane-axis tile for vocab-scale C
_MAX_TILE_N = 512                        # batch-axis tile cap (rows)
_INPUT_VMEM_BUDGET = 16 * 1024 * 1024    # for 2 operands x 2 pipeline buffers


def _round_up(x, m):
    return ((x + m - 1) // m) * m


def _choose_tiles(N, C, itemsize, tile_n=None, tile_c=None):
    # ---- class / lane axis ----
    if tile_c is None:
        tile_c = C if C <= _MAX_TILE_C else _MAX_TILE_C
    if tile_c != C:
        assert tile_c % 128 == 0, "tile_c must be a multiple of 128 (or equal C)"
    padded_c = C if tile_c == C else _round_up(C, tile_c)

    # ---- batch / sublane axis ----
    # 2 operands x 2 pipeline buffers resident per grid step must fit the
    # scoped-VMEM budget (sized conservatively for v7x's 64 MiB VMEM).
    max_rows = max(8, (_INPUT_VMEM_BUDGET // (4 * tile_c * itemsize)) // 8 * 8)
    if tile_n is None:
        tile_n = min(_MAX_TILE_N, max_rows)
        if N <= tile_n:
            # Shrink for small batches (less padding) while keeping >= 2 grid
            # steps whenever the batch allows, so DMA/compute still pipeline.
            tile_n = 8 if N <= 8 else min(max_rows, _round_up(-(-N // 2), 8))
    assert tile_n % 8 == 0 and tile_n >= 8, "tile_n must be a positive multiple of 8"
    padded_n = _round_up(N, tile_n)
    return tile_n, tile_c, padded_n, padded_c


def _nce_kernel(pred_ref, labels_ref, out_ref, acc_num_ref, acc_den_ref):
    """One (batch-tile, class-tile) grid step.

    pred_ref, labels_ref     : VMEM (tile_n, tile_c)
    out_ref                  : VMEM (1, 8, 128) per-batch-tile partial (replicated)
    acc_num_ref, acc_den_ref : VMEM (tile_n, 1) f32, resident across the C axis
    """
    ci = pl.program_id(1)

    @pl.when(ci == 0)
    def _init():
        acc_num_ref[...] = jnp.zeros_like(acc_num_ref)
        acc_den_ref[...] = jnp.zeros_like(acc_den_ref)

    labels = labels_ref[...].astype(jnp.float32)
    pred = pred_ref[...].astype(jnp.float32)

    # Per-row partial reductions over this class tile.
    acc_num_ref[...] += jnp.sum(labels * jnp.log(pred), axis=1, keepdims=True)
    acc_den_ref[...] += jnp.sum(labels, axis=1, keepdims=True)

    @pl.when(ci == pl.num_programs(1) - 1)
    def _finalize():
        # Algebraic simplification: sum_c (labels/denom)*log(pred)
        #                         = (sum_c labels*log(pred)) / denom
        # -> one divide per row instead of tile_n*tile_c divides.
        denom = acc_den_ref[...] + jnp.float32(1e-8)
        per_row = acc_num_ref[...] / denom              # (tile_n, 1)
        partial = jnp.sum(per_row)                      # padded rows contribute 0
        # Lane-dense, unmasked store of the per-tile partial (replicated).
        out_ref[...] = jnp.zeros_like(out_ref) + partial


def normalized_cross_entropy(pred, labels, *, tile_n=None, tile_c=None):
    """pred, labels: [N, C] arrays (f32 or bf16). Returns scalar f32 loss."""
    assert pred.shape == labels.shape and pred.ndim == 2
    N, C = pred.shape
    itemsize = max(jnp.dtype(pred.dtype).itemsize, jnp.dtype(labels.dtype).itemsize)
    tile_n, tile_c, padded_n, padded_c = _choose_tiles(N, C, itemsize, tile_n, tile_c)

    if (padded_n, padded_c) != (N, C):
        # Padding contributes exactly zero: labels -> 0 (numerator & denominator
        # unaffected), pred -> 1 (log(1)=0, avoids 0 * (-inf) NaNs on pad).
        pad_n, pad_c = padded_n - N, padded_c - C
        pred = jnp.pad(pred, ((0, pad_n), (0, pad_c)), constant_values=1)
        labels = jnp.pad(labels, ((0, pad_n), (0, pad_c)), constant_values=0)

    n_bt = padded_n // tile_n
    n_ct = padded_c // tile_c

    # Raise the scoped-VMEM limit above the v5e default (16 MiB) once tiles are
    # enlarged; estimate = double-buffered operands + f32 scratch + output,
    # with 2x headroom, capped below v7x's 64 MiB physical VMEM.
    inputs_bytes = 2 * 2 * tile_n * tile_c * itemsize
    scratch_bytes = 2 * tile_n * 128 * 4
    out_bytes = 2 * 8 * 128 * 4
    vmem_limit = int(min(64 * 1024 * 1024,
                         max(32 * 1024 * 1024,
                             2 * (inputs_bytes + scratch_bytes + out_bytes))))

    partials = pl.pallas_call(
        _nce_kernel,
        out_shape=jax.ShapeDtypeStruct((n_bt, 8, 128), jnp.float32),
        grid_spec=pltpu.PrefetchScalarGridSpec(
            num_scalar_prefetch=0,
            grid=(n_bt, n_ct),                         # reduction (C) axis last
            in_specs=[
                pl.BlockSpec((tile_n, tile_c), lambda i, ci: (i, ci)),
                pl.BlockSpec((tile_n, tile_c), lambda i, ci: (i, ci)),
            ],
            out_specs=pl.BlockSpec((1, 8, 128), lambda i, ci: (i, 0, 0)),
            scratch_shapes=[
                pltpu.VMEM((tile_n, 1), jnp.float32),   # acc_num
                pltpu.VMEM((tile_n, 1), jnp.float32),   # acc_den
            ],
        ),
        compiler_params=pltpu.CompilerParams(
            # Batch axis has independent per-tile outputs -> "parallel" (usable
            # by v7x megacore); class axis is a scratch-carried reduction.
            dimension_semantics=("parallel", "arbitrary"),
            vmem_limit_bytes=vmem_limit,
        ),
    )(pred, labels)

    # Final tiny reduction + normalization in the wrapper: -mean over batch.
    return -jnp.sum(partials[:, 0, 0]) / jnp.float32(N)


def _reference(pred, labels):
    pred = pred.astype(jnp.float32)
    labels = labels.astype(jnp.float32)
    new_labels = labels / (jnp.sum(labels, axis=1, keepdims=True) + 1e-8)
    return -1.0 * jnp.mean(jnp.sum(new_labels * jnp.log(pred), axis=1), axis=0)


if __name__ == "__main__":
    key = jax.random.PRNGKey(0)
    k1, k2, k3, k4 = jax.random.split(key, 4)

    # --- primary test: small shapes implied by the module (soft labels) ---
    N, C = 8, 32
    pred = jax.nn.softmax(jax.random.normal(k1, (N, C), dtype=jnp.float32), axis=1)
    labels = jax.random.uniform(k2, (N, C), dtype=jnp.float32)
    loss = jax.block_until_ready(normalized_cross_entropy(pred, labels))
    ref = _reference(pred, labels)
    assert jnp.allclose(loss, ref, rtol=1e-5, atol=1e-5), (loss, ref)

    # --- ragged batch + multi-tile grid: exercises padding, the parallel batch
    #     axis and the C-axis reduction accumulator (grid = (2, 2)) ---
    N2, C2 = 13, 256
    pred2 = jax.nn.softmax(jax.random.normal(k3, (N2, C2), dtype=jnp.float32), axis=1)
    labels2 = jax.random.uniform(k4, (N2, C2), dtype=jnp.float32)
    loss2 = jax.block_until_ready(
        normalized_cross_entropy(pred2, labels2, tile_n=8, tile_c=128))
    ref2 = _reference(pred2, labels2)
    assert jnp.allclose(loss2, ref2, rtol=1e-5, atol=1e-5), (loss2, ref2)

    # --- bf16 inputs (halved HBM traffic); kernel upcasts to f32 internally ---
    pred3 = pred2.astype(jnp.bfloat16)
    labels3 = labels2.astype(jnp.bfloat16)
    loss3 = jax.block_until_ready(normalized_cross_entropy(pred3, labels3))
    ref3 = _reference(pred3, labels3)
    assert jnp.allclose(loss3, ref3, rtol=1e-3, atol=1e-3), (loss3, ref3)

    print("KERNEL_OK")
</pallas_src>

<mosaic_0001>
module attributes {stable_mosaic.version = 11 : i64} {
  func.func @_nce_kernel(%arg0: i32, %arg1: i32, %arg2: memref<8x32xf32, #tpu.memory_space<vmem>>, %arg3: memref<8x32xf32, #tpu.memory_space<vmem>>, %arg4: memref<1x8x128xf32, #tpu.memory_space<vmem>>, %arg5: memref<8x1xf32, #tpu.memory_space<vmem>>, %arg6: memref<8x1xf32, #tpu.memory_space<vmem>>) attributes {dimension_semantics = [#tpu.dimension_semantics<parallel>, #tpu.dimension_semantics<arbitrary>], iteration_bounds = array<i64: 1, 1>, scalar_prefetch = 0 : i64, scratch_operands = 2 : i64, tpu.core_type = #tpu.core_type<tc>, window_params = [{transform_indices = @transform_0, window_bounds = array<i64: 8, 32>}, {transform_indices = @transform_1, window_bounds = array<i64: 8, 32>}, {transform_indices = @transform_2, window_bounds = array<i64: 1, 8, 128>}]} {
    %c0_i32 = arith.constant 0 : i32
    %0 = arith.cmpi eq, %arg1, %c0_i32 : i32
    %1 = arith.extui %0 : i1 to i32
    %c0_i32_0 = arith.constant 0 : i32
    %2 = arith.cmpi ne, %1, %c0_i32_0 : i32
    scf.if %2 {
      %cst_15 = arith.constant 0.000000e+00 : f32
      %20 = vector.broadcast %cst_15 : f32 to vector<8x1xf32>
      %c0_16 = arith.constant 0 : index
      %c0_17 = arith.constant 0 : index
      %21 = vector.load %arg5[%c0_16, %c0_17] : memref<8x1xf32, #tpu.memory_space<vmem>>, vector<8x1xf32>
      tpu.vector_store %arg5[%c0_16, %c0_17], %20 {strides = array<i32>} : memref<8x1xf32, #tpu.memory_space<vmem>>, vector<8x1xf32>,
      %cst_18 = arith.constant 0.000000e+00 : f32
      %22 = vector.broadcast %cst_18 : f32 to vector<8x1xf32>
      %c0_19 = arith.constant 0 : index
      %c0_20 = arith.constant 0 : index
      %23 = vector.load %arg6[%c0_19, %c0_20] : memref<8x1xf32, #tpu.memory_space<vmem>>, vector<8x1xf32>
      tpu.vector_store %arg6[%c0_19, %c0_20], %22 {strides = array<i32>} : memref<8x1xf32, #tpu.memory_space<vmem>>, vector<8x1xf32>,
    } else {
    }
    %c0 = arith.constant 0 : index
    %c0_1 = arith.constant 0 : index
    %3 = vector.load %arg3[%c0, %c0_1] : memref<8x32xf32, #tpu.memory_space<vmem>>, vector<8x32xf32>
    %c0_2 = arith.constant 0 : index
    %c0_3 = arith.constant 0 : index
    %4 = vector.load %arg2[%c0_2, %c0_3] : memref<8x32xf32, #tpu.memory_space<vmem>>, vector<8x32xf32>
    %c0_4 = arith.constant 0 : index
    %c0_5 = arith.constant 0 : index
    %5 = vector.load %arg5[%c0_4, %c0_5] : memref<8x1xf32, #tpu.memory_space<vmem>>, vector<8x1xf32>
    %6 = math.log %4 : vector<8x32xf32>
    %7 = arith.mulf %3, %6 : vector<8x32xf32>
    %cst = arith.constant dense<0.000000e+00> : vector<8xf32>
    %8 = vector.multi_reduction <add>, %7, %cst [1] : vector<8x32xf32> to vector<8xf32>
    %9 = vector.shape_cast %8 : vector<8xf32> to vector<8x1xf32>
    %10 = arith.addf %5, %9 : vector<8x1xf32>
    %c0_6 = arith.constant 0 : index
    %c0_7 = arith.constant 0 : index
    %11 = vector.load %arg5[%c0_6, %c0_7] : memref<8x1xf32, #tpu.memory_space<vmem>>, vector<8x1xf32>
    tpu.vector_store %arg5[%c0_6, %c0_7], %10 {strides = array<i32>} : memref<8x1xf32, #tpu.memory_space<vmem>>, vector<8x1xf32>,
    %c0_8 = arith.constant 0 : index
    %c0_9 = arith.constant 0 : index
    %12 = vector.load %arg6[%c0_8, %c0_9] : memref<8x1xf32, #tpu.memory_space<vmem>>, vector<8x1xf32>
    %cst_10 = arith.constant dense<0.000000e+00> : vector<8xf32>
    %13 = vector.multi_reduction <add>, %3, %cst_10 [1] : vector<8x32xf32> to vector<8xf32>
    %14 = vector.shape_cast %13 : vector<8xf32> to vector<8x1xf32>
    %15 = arith.addf %12, %14 : vector<8x1xf32>
    %c0_11 = arith.constant 0 : index
    %c0_12 = arith.constant 0 : index
    %16 = vector.load %arg6[%c0_11, %c0_12] : memref<8x1xf32, #tpu.memory_space<vmem>>, vector<8x1xf32>
    tpu.vector_store %arg6[%c0_11, %c0_12], %15 {strides = array<i32>} : memref<8x1xf32, #tpu.memory_space<vmem>>, vector<8x1xf32>,
    %c0_i32_13 = arith.constant 0 : i32
    %17 = arith.cmpi eq, %arg1, %c0_i32_13 : i32
    %18 = arith.extui %17 : i1 to i32
    %c0_i32_14 = arith.constant 0 : i32
    %19 = arith.cmpi ne, %18, %c0_i32_14 : i32
    scf.if %19 {
      %c0_15 = arith.constant 0 : index
      %c0_16 = arith.constant 0 : index
      %20 = vector.load %arg6[%c0_15, %c0_16] : memref<8x1xf32, #tpu.memory_space<vmem>>, vector<8x1xf32>
      %cst_17 = arith.constant 9.99999993E-9 : f32
      %21 = vector.broadcast %cst_17 : f32 to vector<8x1xf32>
      %22 = arith.addf %20, %21 : vector<8x1xf32>
      %c0_18 = arith.constant 0 : index
      %c0_19 = arith.constant 0 : index
      %23 = vector.load %arg5[%c0_18, %c0_19] : memref<8x1xf32, #tpu.memory_space<vmem>>, vector<8x1xf32>
      %24 = arith.divf %23, %22 : vector<8x1xf32>
      %25 = vector.shape_cast %24 : vector<8x1xf32> to vector<1x8x1xf32>
      %cst_20 = arith.constant dense<0.000000e+00> : vector<1xf32>
      %26 = vector.multi_reduction <add>, %25, %cst_20 [1, 2] : vector<1x8x1xf32> to vector<1xf32>
      %27 = vector.shape_cast %26 : vector<1xf32> to vector<1x1x1xf32>
      %28 = vector.extract %27[0, 0, 0] : f32 from vector<1x1x1xf32>
      %cst_21 = arith.constant 0.000000e+00 : f32
      %29 = vector.broadcast %cst_21 : f32 to vector<1x8x128xf32>
      %30 = vector.broadcast %28 : f32 to vector<1x8x128xf32>
      %31 = arith.addf %29, %30 : vector<1x8x128xf32>
      %c0_22 = arith.constant 0 : index
      %c0_23 = arith.constant 0 : index
      %c0_24 = arith.constant 0 : index
      %32 = vector.load %arg4[%c0_22, %c0_23, %c0_24] : memref<1x8x128xf32, #tpu.memory_space<vmem>>, vector<1x8x128xf32>
      tpu.vector_store %arg4[%c0_22, %c0_23, %c0_24], %31 {strides = array<i32>} : memref<1x8x128xf32, #tpu.memory_space<vmem>>, vector<1x8x128xf32>,
    } else {
    }
    return
  }
  func.func @transform_0(%arg0: i32, %arg1: i32) -> (i32, i32) {
    %c0_i32 = arith.constant 0 : i32
    return %arg0, %arg1 : i32, i32
  }
  func.func @transform_1(%arg0: i32, %arg1: i32) -> (i32, i32) {
    %c0_i32 = arith.constant 0 : i32
    return %arg0, %arg1 : i32, i32
  }
  func.func @transform_2(%arg0: i32, %arg1: i32) -> (i32, i32, i32) {
    %c0_i32 = arith.constant 0 : i32
    %c0_i32_0 = arith.constant 0 : i32
    %c0_i32_1 = arith.constant 0 : i32
    return %arg0, %c0_i32, %c0_i32_0 : i32, i32, i32
  }
}

</mosaic_0001>

<bundles_post_ra>
// kernel: tpu_custom_call.1
= control target key start
LH: loop header
LB: loop body
LE: loop exit
PB: predicated region body
PF: predicated region fallthrough
CT: control target
= control target key end

     0   :  { %7 = vsyncpa [#allocation5], 0  ;;  %s241_s0 = inlined_call_operand.hbm [shape: f32[8,32], index: 0, kind: input, shape index: {}]   ;;  %s242_s1 = inlined_call_operand.hbm [shape: f32[8,32], index: 1, kind: input, shape index: {}]   ;;  %s243_s2 = inlined_call_operand.hbm [shape: f32[1,8,128], index: 2, kind: output, shape index: {}]  }
   0x1   :  { %8 = vsyncpa [#allocation8], 0 }
   0x2   :  { %9 = vsyncpa [#allocation6], 0  ;;  %s181_s9 = smov [#allocation4]   ;;  %s182_s11 = smov [#allocation7]  }
   0x3   :  { %s16_s10 = sshll.u32 %s181_s9, 4  ;;  %s26_s12 = sshll.u32 %s182_s11, 4  ;;  %s17_s10 = int_to_ptr.vmem [resolvable:$true] %s16_s10  ;;  %s27_s12 = int_to_ptr.vmem [resolvable:$true] %s26_s12 }
   0x4   :  { %s109_s15 = scalar_lea.hbm %s241_s0, 128 }
   0x5   :  { %p110_p0 = scmp.ne.s32.totalorder %s241_s0, %s109_s15  ;;  %p113_p1 = scmp.lt.u32.totalorder %s109_s15, %s241_s0 }
   0x7   :  { %p115_p2 = pnand %p113_p1, %p110_p0 }
   0x9   :  { %118 = shalt.err (!%p115_p2)
}
   0xa   :  { %s119_s20 = scalar_lea.vmem %s17_s10, 128  ;;  %p124_p4 = scmp.lt.s32.totalorder %s17_s10, %s17_s10 }
   0xb   :  { %p120_p3 = scmp.ne.s32.totalorder %s17_s10, %s119_s20  ;;  %p125_p5 = scmp.lt.s32.totalorder %s119_s20, %s119_s20 }
   0xd   :  { %p126_p6 = por %p125_p5, %p124_p4 }
   0xf   :  { %p127_p7 = pnand %p126_p6, %p120_p3 }
  0x11   :  { %130 = shalt.err (!%p127_p7)
}
  0x12   :  { %19 = dma.hbm_to_vmem [thread:$0]  %s241_s0, 128, %s17_s10, [#allocation5]  }
  0x13   :  { %s131_s25 = scalar_lea.hbm %s242_s1, 128 }
  0x14   :  { %p132_p8 = scmp.ne.s32.totalorder %s242_s1, %s131_s25  ;;  %p135_p9 = scmp.lt.u32.totalorder %s131_s25, %s242_s1 }
  0x16   :  { %p137_p10 = pnand %p135_p9, %p132_p8 }
  0x18   :  { %140 = shalt.err (!%p137_p10)
}
  0x19   :  { %s141_s30 = scalar_lea.vmem %s27_s12, 128  ;;  %p146_p12 = scmp.lt.s32.totalorder %s27_s12, %s27_s12 }
  0x1a   :  { %p142_p11 = scmp.ne.s32.totalorder %s27_s12, %s141_s30  ;;  %p147_p13 = scmp.lt.s32.totalorder %s141_s30, %s141_s30 }
  0x1c   :  { %p148_p0 = por %p147_p13, %p146_p12 }
  0x1e   :  { %p149_p1 = pnand %p148_p0, %p142_p11 }
  0x20   :  { %152 = shalt.err (!%p149_p1)
}
  0x21   :  { %29 = dma.hbm_to_vmem [thread:$0]  %s242_s1, 128, %s27_s12, [#allocation8]  }
  0x22   :  { %175 = dma.done.wait [#allocation5], 128  }
  0x23   :  { %176 = vsyncadd [#allocation5], 4294967168 }
  0x24   :  { %177 = dma.done.wait [#allocation8], 128  }
  0x25   :  { %178 = vsyncadd [#allocation8], 4294967168  ;;  %vm40_vm0 = vcmask 7168   ;;  %v183_v0 = vmov 0.0   ;;  %vm49_vm1 = vcmask 261120   ;;  %v43_v1 = vld [vmem:[#allocation7] sm:$0xff] }
  0x26   :  { %42 = vst.msk [vmem:[#allocation3] sm:$0xff] %vm40_vm0, %v183_v0  ;;  %41 = vst.msk [vmem:[#allocation2] sm:$0xff] %vm40_vm0, %v183_v0  ;;  %v44_v2 = vld [vmem:[#allocation4] sm:$0xff]  ;;  %v57_v3 = vsel %vm49_vm1, %v43_v1, 0.0  ;;  %s184_s1 = smov [#allocation9]  }
  0x27   :  { %105 = vlog2.f32 %v44_v2  ;;  %58 = vadd.xlane.f32.xlu0 %v57_v3  ;;  %s89_s4 = sshll.u32 %s184_s1, 4  ;;  %s90_s4 = int_to_ptr.vmem [resolvable:$true] %s89_s4 }
  0x28   :  { %s153_s6 = scalar_lea.vmem %s90_s4, 128  ;;  %p158_p3 = scmp.lt.s32.totalorder %s90_s4, %s90_s4 }
  0x29   :  { %p154_p2 = scmp.ne.s32.totalorder %s90_s4, %s153_s6  ;;  %p159_p4 = scmp.lt.s32.totalorder %s153_s6, %s153_s6 }
  0x2b   :  { %p160_p5 = por %p159_p4, %p158_p3 }
  0x2d   :  { %v56_v8 = vld [vmem:[#allocation3] sm:$0xff]  ;;  %v45_v13 = vld [vmem:[#allocation2] sm:$0xff]  ;;  %p161_p6 = pnand %p160_p5, %p154_p2 }
  0x31   :  { %v106_v4 = vpop.eup %105 }
  0x32   :  { %v47_v5 = vmul.f32 0.6931472, %v106_v4 }
  0x34   :  { %v48_v6 = vmul.f32 %v47_v5, %v43_v1 }
  0x36   :  { %v50_v7 = vsel %vm49_vm1, %v48_v6, 0.0 }
  0x37   :  { %51 = vadd.xlane.f32.xlu0 %v50_v7 }
  0xb4   :  { %v59_v9 = vpop.xlane.xlu0 %58 }
  0xb5   :  { %v60_v10 = vadd.f32 %v59_v9, %v56_v8 }
  0xb7   :  { %61 = vst.msk [vmem:[#allocation3] sm:$0xff] %vm40_vm0, %v60_v10 }
  0xbe   :  { %v65_v11 = vld [vmem:[#allocation3] sm:$0xff] }
  0xbf   :  { %v66_v12 = vadd.f32 1e-08, %v65_v11 }
  0xc1   :  { %107 = vrcp.f32 %v66_v12 }
  0xc4   :  { %v52_v14 = vpop.xlane.xlu0 %51 }
  0xc5   :  { %v53_v15 = vadd.f32 %v52_v14, %v45_v13 }
  0xc7   :  { %55 = vst.msk [vmem:[#allocation2] sm:$0xff] %vm40_vm0, %v53_v15 }
  0xcb   :  { %v108_v16 = vpop.eup %107 }
  0xce   :  { %v67_v17 = vld [vmem:[#allocation2] sm:$0xff] }
  0xcf   :  { %v69_v18 = vmul.f32 %v108_v16, %v67_v17 }
  0xd1   :  { %v70_v19 = vsel %vm40_vm0, %v69_v18, 0.0 }
  0xd2   :  { %71 = vadd.xlane.f32.xlu1 %v70_v19 }
 0x15f   :  { %v72_v20 = vpop.xlane.xlu1 %71 }
 0x160   :  { %v73_v21 = vrot.slane %v72_v20, 4 }
 0x162   :  { %v74_v22 = vadd.f32 %v73_v21, %v72_v20 }
 0x164   :  { %v75_v23 = vrot.slane %v74_v22, 2 }
 0x166   :  { %v76_v24 = vadd.f32 %v75_v23, %v74_v22 }
 0x168   :  { %v77_v25 = vrot.slane %v76_v24, 1 }
 0x16a   :  { %v78_v26 = vadd.f32 %v77_v25, %v76_v24 }
 0x16c   :  { %99 = vpush %v78_v26 }
 0x19d   :  { %s100_s5 = spop %99 }
 0x19e   :  { %v80_v27 = vstv %s100_s5 }
 0x19f   :  { %82 = vst [vmem:[#allocation9] sm:$0xff] %v80_v27 }
 0x1a0   :  { %164 = shalt.err (!%p161_p6)
}
 0x1a1   :  { %s165_s9 = scalar_lea.hbm %s243_s2, 128 }
 0x1a2   :  { %p166_p7 = scmp.ne.s32.totalorder %s243_s2, %s165_s9  ;;  %p169_p8 = scmp.lt.u32.totalorder %s165_s9, %s243_s2 }
 0x1a4   :  { %p171_p9 = pnand %p169_p8, %p166_p7 }
 0x1a6   :  { %174 = shalt.err (!%p171_p9)
}
 0x1a7   :  { %92 = dma.vmem_to_hbm [thread:$0]  %s90_s4, 128, %s243_s2, [#allocation6]  }
 0x1a8   :  { %179 = dma.done.wait [#allocation6], 128  }
 0x1a9   :  { %180 = vsyncadd [#allocation6], 4294967168 }
 0x1aa   :  { %96 = vsyncpa [#allocation5], 1 }
 0x1ab   :  { %97 = vsyncpa [#allocation8], 1 }
 0x1ac   :  { %98 = vsyncpa [#allocation6], 1 }

</bundles_post_ra>
